<compile_context>
chip_gen: v7x
topology: tpu7x:2x2x1
jax: 0.10.0
libtpu: 0.0.40
codegen_flags: <defaults>
</compile_context>

<pallas_src>
import functools

import jax
import jax.numpy as jnp
from jax.experimental import pallas as pl
from jax.experimental.pallas import tpu as pltpu


def _round_up(x: int, m: int) -> int:
    return (x + m - 1) // m * m


def _pad2d(arr, rows, cols, dtype):
    """Cast to dtype and zero-pad to (rows, cols); no-op copy if already aligned."""
    arr = arr.astype(dtype)
    pr, pc = rows - arr.shape[0], cols - arr.shape[1]
    if pr or pc:
        arr = jnp.pad(arr, ((0, pr), (0, pc)))
    return arr


def _lora_kernel(x_ref, wp_ref, xa_ref, b_ref, o_ref, acc_ref):
    # x_ref  : (tm, tk)    bf16 input tile
    # wp_ref : (tk, tn)    bf16 pretrained weight tile (pre-transposed)
    # xa_ref : (tm, r_pad) bf16 precomputed x @ A^T tile (scaling folded into B)
    # b_ref  : (r_pad, tn) bf16 scaled lora_B tile (pre-transposed)
    # o_ref  : (tm, tn)    output tile
    # acc_ref: (tm, tn)    f32 accumulator for the K reduction
    k = pl.program_id(2)

    @pl.when(k == 0)
    def _():
        acc_ref[...] = jnp.zeros_like(acc_ref)

    acc_ref[...] += jnp.dot(x_ref[...], wp_ref[...],
                            preferred_element_type=jnp.float32)

    @pl.when(k == pl.num_programs(2) - 1)
    def _():
        # Single rank-r epilogue matmul per (m, n) tile.
        lora = jnp.dot(xa_ref[...], b_ref[...],
                       preferred_element_type=jnp.float32)
        o_ref[...] = (acc_ref[...] + lora).astype(o_ref.dtype)


def prepare_lora_params(w_pretrained, lora_a, lora_b, *, lora_alpha, r,
                        tn=512, tk=1024, compute_dtype=jnp.bfloat16):
    """One-time weight preprocessing (cache the result across forward calls).

    PyTorch layouts: w_pretrained (out_dim, in_dim), lora_a (r, in_dim),
    lora_b (out_dim, r).  Scaling (= lora_alpha / r) is folded into B here.
    """
    out_dim, in_dim = w_pretrained.shape
    scaling = lora_alpha / r

    # Tile granularity: 256-wide N for full MXU width on v6e/v7x, 128-wide K.
    tn = min(tn, _round_up(out_dim, 256))
    tk = min(tk, _round_up(in_dim, 128))
    n_pad = _round_up(out_dim, tn)
    k_pad = _round_up(in_dim, tk)
    r_pad = _round_up(max(r, 128), 128)   # lane-dense rank dimension

    wp_t = _pad2d(jnp.asarray(w_pretrained).T, k_pad, n_pad, compute_dtype)
    # A^T kept at true in_dim rows (used by the JAX-side skinny matmul on
    # unpadded x); rank zero-padded so the padded xa columns contribute 0.
    a_t = _pad2d(jnp.asarray(lora_a).T, in_dim, r_pad, compute_dtype)
    b_t = _pad2d(scaling * jnp.asarray(lora_b).T, r_pad, n_pad, compute_dtype)

    return dict(wp_t=wp_t, a_t=a_t, b_t=b_t, tn=tn, tk=tk, r_pad=r_pad,
                n_pad=n_pad, k_pad=k_pad, in_dim=in_dim, out_dim=out_dim,
                compute_dtype=compute_dtype)


def _vmem_footprint_bytes(tm, tn, tk, r_pad, out_itemsize):
    bf = 2  # bf16 operands
    dbl = 2 * (tm * tk * bf + tk * tn * bf + tm * r_pad * bf
               + r_pad * tn * bf + tm * tn * out_itemsize)
    return dbl + tm * tn * 4  # + f32 accumulator scratch


def linera_lora_forward(x, params, *, tm=512):
    """x: (..., in_dim); params from prepare_lora_params()."""
    in_dim = params["in_dim"]
    out_dim = params["out_dim"]
    tn, tk = params["tn"], params["tk"]
    n_pad, k_pad, r_pad = params["n_pad"], params["k_pad"], params["r_pad"]
    compute_dtype = params["compute_dtype"]
    out_dtype = x.dtype

    orig_shape = x.shape
    x2d = x.reshape(-1, in_dim)
    M = x2d.shape[0]

    tm = min(tm, _round_up(M, 16))        # bf16 packs 2 rows / sublane
    m_pad = _round_up(M, tm)

    x_c = x2d.astype(compute_dtype)
    # Skinny A-path matmul, computed once per forward (not per (n, k) step).
    xa = jnp.dot(x_c, params["a_t"],
                 preferred_element_type=jnp.float32).astype(compute_dtype)

    x_p = _pad2d(x_c, m_pad, k_pad, compute_dtype)
    xa_p = _pad2d(xa, m_pad, r_pad, compute_dtype)

    grid = (m_pad // tm, n_pad // tn, k_pad // tk)

    cp_kwargs = dict(dimension_semantics=("parallel", "parallel", "arbitrary"))
    est = _vmem_footprint_bytes(tm, tn, tk, r_pad, jnp.dtype(out_dtype).itemsize)
    if est > (30 << 20):
        # Raise scoped VMEM only when a larger tile sweep needs it; keep the
        # request capped so v7x (64 MiB/TC) retains compiler headroom.
        cp_kwargs["vmem_limit_bytes"] = int(min(est + est // 4, 56 << 20))

    out_padded = pl.pallas_call(
        _lora_kernel,
        out_shape=jax.ShapeDtypeStruct((m_pad, n_pad), out_dtype),
        grid_spec=pltpu.PrefetchScalarGridSpec(
            num_scalar_prefetch=0,
            grid=grid,
            in_specs=[
                pl.BlockSpec((tm, tk), lambda mi, ni, ki: (mi, ki)),     # x
                pl.BlockSpec((tk, tn), lambda mi, ni, ki: (ki, ni)),     # W^T
                pl.BlockSpec((tm, r_pad), lambda mi, ni, ki: (mi, 0)),   # x@A^T
                pl.BlockSpec((r_pad, tn), lambda mi, ni, ki: (0, ni)),   # B^T*s
            ],
            out_specs=pl.BlockSpec((tm, tn), lambda mi, ni, ki: (mi, ni)),
            scratch_shapes=[pltpu.VMEM((tm, tn), jnp.float32)],
        ),
        compiler_params=pltpu.CompilerParams(**cp_kwargs),
    )(x_p, params["wp_t"], xa_p, params["b_t"])

    out2d = out_padded[:M, :out_dim]
    return out2d.reshape(*orig_shape[:-1], out_dim)


if __name__ == "__main__":
    import math

    # Small shapes consistent with a Linear LoRA adapter.
    batch, seq, in_dim, out_dim, r = 2, 8, 32, 64, 8
    lora_alpha = 16.0

    key = jax.random.PRNGKey(0)
    kx, kw, ka, kb = jax.random.split(key, 4)

    x = jax.random.normal(kx, (batch, seq, in_dim), dtype=jnp.float32)
    # pretrained Linear weight (frozen): (out_dim, in_dim)
    w_pretrained = jax.random.normal(kw, (out_dim, in_dim), dtype=jnp.float32) * 0.1
    # lora_A: kaiming-normal-ish init, (r, in_dim)
    lora_a = jax.random.normal(ka, (r, in_dim), dtype=jnp.float32) * math.sqrt(2.0 / in_dim)
    # lora_B is zero-initialized in the module; use small nonzero values here
    # so the LoRA path is actually exercised / verifiable.
    lora_b = jax.random.normal(kb, (out_dim, r), dtype=jnp.float32) * 0.05

    # One-time weight preparation (would be cached on the module in practice).
    params = prepare_lora_params(w_pretrained, lora_a, lora_b,
                                 lora_alpha=lora_alpha, r=r)

    out = linera_lora_forward(x, params)
    out = jax.block_until_ready(out)

    # Pure-JAX reference on the same bf16-rounded operands, f32 accumulation.
    scaling = lora_alpha / r
    xb = x.astype(jnp.bfloat16).astype(jnp.float32)
    wpb = w_pretrained.astype(jnp.bfloat16).astype(jnp.float32)
    ab = lora_a.astype(jnp.bfloat16).astype(jnp.float32)
    bb = (scaling * lora_b).astype(jnp.bfloat16).astype(jnp.float32)
    hi = jax.lax.Precision.HIGHEST
    ref = (jnp.matmul(xb, wpb.T, precision=hi)
           + jnp.matmul(jnp.matmul(xb, ab.T, precision=hi), bb.T, precision=hi))

    assert out.shape == (batch, seq, out_dim)
    assert jnp.allclose(out, ref, atol=3e-2, rtol=3e-2), "mismatch vs reference"

    print("KERNEL_OK")
</pallas_src>

<mosaic_0001>
module attributes {stable_mosaic.version = 11 : i64} {
  func.func @_lora_kernel(%arg0: i32, %arg1: i32, %arg2: i32, %arg3: memref<16x128xbf16, #tpu.memory_space<vmem>>, %arg4: memref<128x256xbf16, #tpu.memory_space<vmem>>, %arg5: memref<16x128xbf16, #tpu.memory_space<vmem>>, %arg6: memref<128x256xbf16, #tpu.memory_space<vmem>>, %arg7: memref<16x256xf32, #tpu.memory_space<vmem>>, %arg8: memref<16x256xf32, #tpu.memory_space<vmem>>) attributes {dimension_semantics = [#tpu.dimension_semantics<parallel>, #tpu.dimension_semantics<parallel>, #tpu.dimension_semantics<arbitrary>], iteration_bounds = array<i64: 1, 1, 1>, scalar_prefetch = 0 : i64, scratch_operands = 1 : i64, tpu.core_type = #tpu.core_type<tc>, window_params = [{transform_indices = @transform_0, window_bounds = array<i64: 16, 128>}, {transform_indices = @transform_1, window_bounds = array<i64: 128, 256>}, {transform_indices = @transform_2, window_bounds = array<i64: 16, 128>}, {transform_indices = @transform_3, window_bounds = array<i64: 128, 256>}, {transform_indices = @transform_4, window_bounds = array<i64: 16, 256>}]} {
    %c0_i32 = arith.constant 0 : i32
    %0 = arith.cmpi eq, %arg2, %c0_i32 : i32
    %1 = arith.extui %0 : i1 to i32
    %c0_i32_0 = arith.constant 0 : i32
    %2 = arith.cmpi ne, %1, %c0_i32_0 : i32
    scf.if %2 {
      %cst_10 = arith.constant 0.000000e+00 : f32
      %12 = vector.broadcast %cst_10 : f32 to vector<16x256xf32>
      %c0_11 = arith.constant 0 : index
      %c0_12 = arith.constant 0 : index
      %13 = vector.load %arg8[%c0_11, %c0_12] : memref<16x256xf32, #tpu.memory_space<vmem>>, vector<16x256xf32>
      tpu.vector_store %arg8[%c0_11, %c0_12], %12 {strides = array<i32>} : memref<16x256xf32, #tpu.memory_space<vmem>>, vector<16x256xf32>,
    } else {
    }
    %c0 = arith.constant 0 : index
    %c0_1 = arith.constant 0 : index
    %3 = vector.load %arg8[%c0, %c0_1] : memref<16x256xf32, #tpu.memory_space<vmem>>, vector<16x256xf32>
    %c0_2 = arith.constant 0 : index
    %c0_3 = arith.constant 0 : index
    %4 = vector.load %arg3[%c0_2, %c0_3] : memref<16x128xbf16, #tpu.memory_space<vmem>>, vector<16x128xbf16>
    %c0_4 = arith.constant 0 : index
    %c0_5 = arith.constant 0 : index
    %5 = vector.load %arg4[%c0_4, %c0_5] : memref<128x256xbf16, #tpu.memory_space<vmem>>, vector<128x256xbf16>
    %cst = arith.constant dense<0.000000e+00> : vector<16x256xf32>
    %6 = tpu.matmul %4, %5, %cst {dimension_numbers = #tpu.dot_dimension_numbers<[1], [0], [0], [1], [0, 0, 1, 1], [], []>} : vector<16x128xbf16>, vector<128x256xbf16>, vector<16x256xf32> -> vector<16x256xf32>
    %7 = arith.addf %3, %6 : vector<16x256xf32>
    %c0_6 = arith.constant 0 : index
    %c0_7 = arith.constant 0 : index
    %8 = vector.load %arg8[%c0_6, %c0_7] : memref<16x256xf32, #tpu.memory_space<vmem>>, vector<16x256xf32>
    tpu.vector_store %arg8[%c0_6, %c0_7], %7 {strides = array<i32>} : memref<16x256xf32, #tpu.memory_space<vmem>>, vector<16x256xf32>,
    %c0_i32_8 = arith.constant 0 : i32
    %9 = arith.cmpi eq, %arg2, %c0_i32_8 : i32
    %10 = arith.extui %9 : i1 to i32
    %c0_i32_9 = arith.constant 0 : i32
    %11 = arith.cmpi ne, %10, %c0_i32_9 : i32
    scf.if %11 {
      %c0_10 = arith.constant 0 : index
      %c0_11 = arith.constant 0 : index
      %12 = vector.load %arg5[%c0_10, %c0_11] : memref<16x128xbf16, #tpu.memory_space<vmem>>, vector<16x128xbf16>
      %c0_12 = arith.constant 0 : index
      %c0_13 = arith.constant 0 : index
      %13 = vector.load %arg6[%c0_12, %c0_13] : memref<128x256xbf16, #tpu.memory_space<vmem>>, vector<128x256xbf16>
      %cst_14 = arith.constant dense<0.000000e+00> : vector<16x256xf32>
      %14 = tpu.matmul %12, %13, %cst_14 {dimension_numbers = #tpu.dot_dimension_numbers<[1], [0], [0], [1], [0, 0, 1, 1], [], []>} : vector<16x128xbf16>, vector<128x256xbf16>, vector<16x256xf32> -> vector<16x256xf32>
      %c0_15 = arith.constant 0 : index
      %c0_16 = arith.constant 0 : index
      %15 = vector.load %arg8[%c0_15, %c0_16] : memref<16x256xf32, #tpu.memory_space<vmem>>, vector<16x256xf32>
      %16 = arith.addf %15, %14 : vector<16x256xf32>
      %c0_17 = arith.constant 0 : index
      %c0_18 = arith.constant 0 : index
      %17 = vector.load %arg7[%c0_17, %c0_18] : memref<16x256xf32, #tpu.memory_space<vmem>>, vector<16x256xf32>
      tpu.vector_store %arg7[%c0_17, %c0_18], %16 {strides = array<i32>} : memref<16x256xf32, #tpu.memory_space<vmem>>, vector<16x256xf32>,
    } else {
    }
    return
  }
  func.func @transform_0(%arg0: i32, %arg1: i32, %arg2: i32) -> (i32, i32) {
    %c0_i32 = arith.constant 0 : i32
    return %arg0, %arg2 : i32, i32
  }
  func.func @transform_1(%arg0: i32, %arg1: i32, %arg2: i32) -> (i32, i32) {
    %c0_i32 = arith.constant 0 : i32
    return %arg2, %arg1 : i32, i32
  }
  func.func @transform_2(%arg0: i32, %arg1: i32, %arg2: i32) -> (i32, i32) {
    %c0_i32 = arith.constant 0 : i32
    %c0_i32_0 = arith.constant 0 : i32
    return %arg0, %c0_i32 : i32, i32
  }
  func.func @transform_3(%arg0: i32, %arg1: i32, %arg2: i32) -> (i32, i32) {
    %c0_i32 = arith.constant 0 : i32
    %c0_i32_0 = arith.constant 0 : i32
    return %c0_i32, %arg1 : i32, i32
  }
  func.func @transform_4(%arg0: i32, %arg1: i32, %arg2: i32) -> (i32, i32) {
    %c0_i32 = arith.constant 0 : i32
    return %arg0, %arg1 : i32, i32
  }
}

</mosaic_0001>

<bundles_post_ra>
// kernel: tpu_custom_call.1
= control target key start
LH: loop header
LB: loop body
LE: loop exit
PB: predicated region body
PF: predicated region fallthrough
CT: control target
= control target key end

     0   :  { %9 = vsyncpa [#allocation4], 0  ;;  %s750_s0 = inlined_call_operand.hbm [shape: bf16[16,128], index: 0, kind: input, shape index: {}]   ;;  %s751_s1 = inlined_call_operand.hbm [shape: bf16[128,256], index: 1, kind: input, shape index: {}]   ;;  %s752_s2 = inlined_call_operand.hbm [shape: bf16[16,128], index: 2, kind: input, shape index: {}]   ;;  %s753_s3 = inlined_call_operand.hbm [shape: bf16[128,256], index: 3, kind: input, shape index: {}]   ;;  %s754_s4 = inlined_call_operand.hbm [shape: f32[16,256], index: 4, kind: output, shape index: {}]  }
   0x1   :  { %10 = vsyncpa [#allocation7], 0 }
   0x2   :  { %11 = vsyncpa [#allocation10], 0 }
   0x3   :  { %12 = vsyncpa [#allocation5], 0  ;;  %s640_s15 = smov [#allocation6]   ;;  %s522_s19 = scalar_lea.hbm %s751_s1, 2048 }
   0x4   :  { %s30_s16 = sshll.u32 %s640_s15, 4  ;;  %p523_p0 = scmp.ne.s32.totalorder %s751_s1, %s522_s19  ;;  %s31_s16 = int_to_ptr.vmem [resolvable:$true] %s30_s16 }
   0x5   :  { %p526_p1 = scmp.lt.u32.totalorder %s522_s19, %s751_s1 }
   0x7   :  { %p528_p2 = pnand %p526_p1, %p523_p0 }
   0x9   :  { %531 = shalt.err (!%p528_p2)
}
   0xa   :  { %s532_s24 = scalar_lea.vmem %s31_s16, 2048  ;;  %p537_p4 = scmp.lt.s32.totalorder %s31_s16, %s31_s16 }
   0xb   :  { %p533_p3 = scmp.ne.s32.totalorder %s31_s16, %s532_s24  ;;  %p538_p5 = scmp.lt.s32.totalorder %s532_s24, %s532_s24 }
   0xd   :  { %p539_p6 = por %p538_p5, %p537_p4 }
   0xf   :  { %p540_p7 = pnand %p539_p6, %p533_p3 }
  0x11   :  { %543 = shalt.err (!%p540_p7)
}
  0x12   :  { %s641_s25 = smov 128   ;;  %s642_s26 = smov 8  }
  0x13   :  { %36 = dma.hbm_to_vmem [thread:$0]  %s751_s1, 2048, %s31_s16, [#allocation7], %s641_s25, %s641_s25, %s642_s26  }
  0x14   :  { %s643_s29 = smov [#allocation3]   ;;  %s544_s7 = scalar_lea.hbm %s750_s0, 128 }
  0x15   :  { %s18_s30 = sshll.u32 %s643_s29, 4  ;;  %p545_p8 = scmp.ne.s32.totalorder %s750_s0, %s544_s7  ;;  %s19_s30 = int_to_ptr.vmem [resolvable:$true] %s18_s30 }
  0x16   :  { %p548_p9 = scmp.lt.u32.totalorder %s544_s7, %s750_s0 }
  0x18   :  { %p550_p10 = pnand %p548_p9, %p545_p8 }
  0x1a   :  { %553 = shalt.err (!%p550_p10)
}
  0x1b   :  { %s554_s12 = scalar_lea.vmem %s19_s30, 128  ;;  %p559_p12 = scmp.lt.s32.totalorder %s19_s30, %s19_s30 }
  0x1c   :  { %p555_p11 = scmp.ne.s32.totalorder %s19_s30, %s554_s12  ;;  %p560_p13 = scmp.lt.s32.totalorder %s554_s12, %s554_s12 }
  0x1e   :  { %p561_p0 = por %p560_p13, %p559_p12 }
  0x20   :  { %p562_p1 = pnand %p561_p0, %p555_p11 }
  0x22   :  { %565 = shalt.err (!%p562_p1)
}
  0x23   :  { %s644_s1 = smov 64   ;;  %s645_s13 = smov 4  }
  0x24   :  { %24 = dma.hbm_to_vmem [thread:$0]  %s750_s0, 128, %s19_s30, [#allocation4], %s644_s1, %s644_s1, %s645_s13  }
  0x25   :  { %s646_s16 = smov [#allocation8]   ;;  %s647_s18 = smov [#allocation9]  }
  0x26   :  { %s42_s17 = sshll.u32 %s646_s16, 4  ;;  %s54_s19 = sshll.u32 %s647_s18, 4  ;;  %s43_s17 = int_to_ptr.vmem [resolvable:$true] %s42_s17  ;;  %s704_s19 = int_to_ptr.vmem [resolvable:$true] %s54_s19 }
  0x27   :  { %s566_s22 = scalar_lea.hbm %s752_s2, 128 }
  0x28   :  { %p567_p2 = scmp.ne.s32.totalorder %s752_s2, %s566_s22  ;;  %p570_p3 = scmp.lt.u32.totalorder %s566_s22, %s752_s2 }
  0x2a   :  { %p572_p4 = pnand %p570_p3, %p567_p2 }
  0x2c   :  { %575 = shalt.err (!%p572_p4)
}
  0x2d   :  { %s576_s0 = scalar_lea.vmem %s43_s17, 128  ;;  %p581_p6 = scmp.lt.s32.totalorder %s43_s17, %s43_s17 }
  0x2e   :  { %p577_p5 = scmp.ne.s32.totalorder %s43_s17, %s576_s0  ;;  %p582_p7 = scmp.lt.s32.totalorder %s576_s0, %s576_s0 }
  0x30   :  { %p583_p8 = por %p582_p7, %p581_p6 }
  0x32   :  { %p584_p9 = pnand %p583_p8, %p577_p5 }
  0x34   :  { %587 = shalt.err (!%p584_p9)
}
  0x35   :  { %48 = dma.hbm_to_vmem [thread:$0]  %s752_s2, 128, %s43_s17, [#allocation7], %s644_s1, %s644_s1, %s645_s13  }
  0x36   :  { %s588_s7 = scalar_lea.hbm %s753_s3, 2048 }
  0x37   :  { %p589_p10 = scmp.ne.s32.totalorder %s753_s3, %s588_s7  ;;  %p592_p11 = scmp.lt.u32.totalorder %s588_s7, %s753_s3 }
  0x39   :  { %p594_p12 = pnand %p592_p11, %p589_p10 }
  0x3b   :  { %597 = shalt.err (!%p594_p12)
}
  0x3c   :  { %s598_s12 = scalar_lea.vmem %s704_s19, 2048  ;;  %p603_p0 = scmp.lt.s32.totalorder %s704_s19, %s704_s19 }
  0x3d   :  { %p599_p13 = scmp.ne.s32.totalorder %s704_s19, %s598_s12  ;;  %p604_p1 = scmp.lt.s32.totalorder %s598_s12, %s598_s12 }
  0x3f   :  { %p605_p2 = por %p604_p1, %p603_p0 }
  0x41   :  { %p606_p3 = pnand %p605_p2, %p599_p13 }
  0x43   :  { %609 = shalt.err (!%p606_p3)
}
  0x44   :  { %60 = dma.hbm_to_vmem [thread:$0]  %s753_s3, 2048, %s704_s19, [#allocation10], %s641_s25, %s641_s25, %s642_s26  }
  0x45   :  { %632 = dma.done.wait [#allocation4], 128  }
  0x46   :  { %633 = vsyncadd [#allocation4], 4294967168 }
  0x47   :  { %634 = dma.done.wait [#allocation7], 2176  }
  0x48   :  { %635 = vsyncadd [#allocation7], 4294965120 }
  0x49   :  { %636 = dma.done.wait [#allocation10], 2048  }
  0x4a   :  { %637 = vsyncadd [#allocation10], 4294965248  ;;  %v648_v0 = vmov 0   ;;  %v472_v1 = vld [vmem:[#allocation6 + $0x4] ss:$8 sps:$4 sm:$0xff]   ;;  %v520_v33 = vld [vmem:[#allocation3] sm:$0xff]  }
  0x4b   :  { %222 = vmatprep.mubr.bf16.mxu1 %v648_v0  ;;  %380 = vmatprep.mubr.bf16.mxu0 %v648_v0  ;;  %v474_v2 = vld [vmem:[#allocation9 + $0x4] ss:$8 sps:$4 sm:$0xff]   ;;  %v476_v3 = vld [vmem:[#allocation6] ss:$8 sps:$4 sm:$0xff]   ;;  %v480_v6 = vld [vmem:[#allocation9 + $0x14] ss:$8 sps:$4 sm:$0xff]  }
  0x4c   :  { %190 = vmatprep.subr.bf16.mxu1 %v472_v1  ;;  %v477_v4 = vld [vmem:[#allocation9] ss:$8 sps:$4 sm:$0xff]   ;;  %348 = vmatprep.subr.bf16.mxu0 %v474_v2  ;;  %v478_v5 = vld [vmem:[#allocation6 + $0x14] ss:$8 sps:$4 sm:$0xff]   ;;  %v483_v8 = vld [vmem:[#allocation9 + $0x10] ss:$8 sps:$4 sm:$0xff]  }
  0x4d   :  { %191 = vmatpush1.bf16.msra.mxu1 %v476_v3  ;;  %349 = vmatpush1.bf16.msra.mxu0 %v477_v4  ;;  %v482_v7 = vld [vmem:[#allocation6 + $0x10] ss:$8 sps:$4 sm:$0xff]   ;;  %v484_v9 = vld [vmem:[#allocation6 + $0x24] ss:$8 sps:$4 sm:$0xff]   ;;  %v488_v11 = vld [vmem:[#allocation6 + $0x20] ss:$8 sps:$4 sm:$0xff]  }
  0x4e   :  { %192 = vmatprep.subr.bf16.mxu1 %v478_v5  ;;  %350 = vmatprep.subr.bf16.mxu0 %v480_v6  ;;  %v486_v10 = vld [vmem:[#allocation9 + $0x24] ss:$8 sps:$4 sm:$0xff]   ;;  %v489_v12 = vld [vmem:[#allocation9 + $0x20] ss:$8 sps:$4 sm:$0xff]   ;;  %v492_v14 = vld [vmem:[#allocation9 + $0x34] ss:$8 sps:$4 sm:$0xff]  }
  0x4f   :  { %v490_v13 = vld [vmem:[#allocation6 + $0x34] ss:$8 sps:$4 sm:$0xff]   ;;  %v494_v15 = vld [vmem:[#allocation6 + $0x30] ss:$8 sps:$4 sm:$0xff]   ;;  %v496_v17 = vld [vmem:[#allocation6 + $0x44] ss:$8 sps:$4 sm:$0xff]  }
  0x50   :  { %v495_v16 = vld [vmem:[#allocation9 + $0x30] ss:$8 sps:$4 sm:$0xff]   ;;  %v498_v18 = vld [vmem:[#allocation9 + $0x44] ss:$8 sps:$4 sm:$0xff]   ;;  %v501_v20 = vld [vmem:[#allocation9 + $0x40] ss:$8 sps:$4 sm:$0xff]  }
  0x51   :  { %193 = vmatpush1.bf16.msra.mxu1 %v482_v7  ;;  %351 = vmatpush1.bf16.msra.mxu0 %v483_v8  ;;  %v500_v19 = vld [vmem:[#allocation6 + $0x40] ss:$8 sps:$4 sm:$0xff]   ;;  %v502_v21 = vld [vmem:[#allocation6 + $0x54] ss:$8 sps:$4 sm:$0xff]   ;;  %v506_v23 = vld [vmem:[#allocation6 + $0x50] ss:$8 sps:$4 sm:$0xff]  }
  0x52   :  { %194 = vmatprep.subr.bf16.mxu1 %v484_v9  ;;  %352 = vmatprep.subr.bf16.mxu0 %v486_v10  ;;  %v504_v22 = vld [vmem:[#allocation9 + $0x54] ss:$8 sps:$4 sm:$0xff]   ;;  %v507_v24 = vld [vmem:[#allocation9 + $0x50] ss:$8 sps:$4 sm:$0xff]   ;;  %v510_v26 = vld [vmem:[#allocation9 + $0x64] ss:$8 sps:$4 sm:$0xff]  }
  0x53   :  { %v508_v25 = vld [vmem:[#allocation6 + $0x64] ss:$8 sps:$4 sm:$0xff]   ;;  %v512_v27 = vld [vmem:[#allocation6 + $0x60] ss:$8 sps:$4 sm:$0xff]   ;;  %v514_v29 = vld [vmem:[#allocation6 + $0x74] ss:$8 sps:$4 sm:$0xff]  }
  0x54   :  { %v513_v28 = vld [vmem:[#allocation9 + $0x60] ss:$8 sps:$4 sm:$0xff]   ;;  %v516_v30 = vld [vmem:[#allocation9 + $0x74] ss:$8 sps:$4 sm:$0xff]   ;;  %v519_v32 = vld [vmem:[#allocation9 + $0x70] ss:$8 sps:$4 sm:$0xff]  }
  0x55   :  { %195 = vmatpush1.bf16.msra.mxu1 %v488_v11  ;;  %353 = vmatpush1.bf16.msra.mxu0 %v489_v12  ;;  %v518_v31 = vld [vmem:[#allocation6 + $0x70] ss:$8 sps:$4 sm:$0xff]   ;;  %v521_v34 = vld [vmem:[#allocation8] sm:$0xff]   ;;  %s649_s3 = smov [#allocation11]  }
  0x56   :  { %196 = vmatprep.subr.bf16.mxu1 %v490_v13  ;;  %354 = vmatprep.subr.bf16.mxu0 %v492_v14  ;;  %s408_s25 = sshll.u32 %s649_s3, 4  ;;  %s409_s25 = int_to_ptr.vmem [resolvable:$true] %s408_s25 }
  0x57   :  { %s610_s26 = scalar_lea.vmem %s409_s25, 512  ;;  %p615_p5 = scmp.lt.s32.totalorder %s409_s25, %s409_s25 }
  0x58   :  { %p611_p4 = scmp.ne.s32.totalorder %s409_s25, %s610_s26  ;;  %p616_p6 = scmp.lt.s32.totalorder %s610_s26, %s610_s26 }
  0x59   :  { %197 = vmatpush1.bf16.msra.mxu1 %v494_v15  ;;  %355 = vmatpush1.bf16.msra.mxu0 %v495_v16 }
  0x5a   :  { %198 = vmatprep.subr.bf16.mxu1 %v496_v17  ;;  %356 = vmatprep.subr.bf16.mxu0 %v498_v18  ;;  %p617_p7 = por %p616_p6, %p615_p5 }
  0x5c   :  { %p618_p8 = pnand %p617_p7, %p611_p4 }
  0x5d   :  { %199 = vmatpush1.bf16.msra.mxu1 %v500_v19  ;;  %357 = vmatpush1.bf16.msra.mxu0 %v501_v20 }
  0x5e   :  { %200 = vmatprep.subr.bf16.mxu1 %v502_v21  ;;  %358 = vmatprep.subr.bf16.mxu0 %v504_v22 }
  0x61   :  { %201 = vmatpush1.bf16.msra.mxu1 %v506_v23  ;;  %359 = vmatpush1.bf16.msra.mxu0 %v507_v24 }
  0x62   :  { %202 = vmatprep.subr.bf16.mxu1 %v508_v25  ;;  %360 = vmatprep.subr.bf16.mxu0 %v510_v26 }
  0x65   :  { %203 = vmatpush1.bf16.msra.mxu1 %v512_v27  ;;  %361 = vmatpush1.bf16.msra.mxu0 %v513_v28 }
  0x66   :  { %204 = vmatprep.subr.bf16.mxu1 %v514_v29  ;;  %362 = vmatprep.subr.bf16.mxu0 %v516_v30 }
  0x69   :  { %205 = vmatpush1.bf16.msra.mxu1 %v518_v31  ;;  %363 = vmatpush1.bf16.msra.mxu0 %v519_v32 }
  0x6c   :  { %223 = vmatmul.mubr.bf16.vlgmr.msra.gmra.mrb[0].mxu1 %v520_v33  ;;  %381 = vmatmul.mubr.bf16.vlgmr.msra.gmra.mrb[0].mxu0 %v521_v34 }
 0x13f   :  { %v224_v35 = vpop.f32.mrb[0].mxu1  ;;  %v382_v36 = vpop.f32.mrb[0].mxu0 }
 0x140   :  { %v395_v37 = vadd.f32 %v382_v36, %v224_v35  ;;  %v226_v38 = vpop.f32.mrb[1].mxu1  ;;  %v384_v39 = vpop.f32.mrb[1].mxu0 }
 0x141   :  { %v396_v40 = vadd.f32 %v384_v39, %v226_v38  ;;  %v228_v41 = vpop.f32.mrb[2].mxu1  ;;  %v386_v42 = vpop.f32.mrb[2].mxu0 }
 0x142   :  { %399 = vst [vmem:[#allocation11] sm:$0xff] %v395_v37  ;;  %v397_v43 = vadd.f32 %v386_v42, %v228_v41  ;;  %v230_v44 = vpop.f32.mrb[3].mxu1  ;;  %v388_v45 = vpop.f32.mrb[3].mxu0 }
 0x143   :  { %400 = vst [vmem:[#allocation11 + $0x8] sm:$0xff] %v396_v40  ;;  %v398_v46 = vadd.f32 %v388_v45, %v230_v44 }
 0x144   :  { %401 = vst [vmem:[#allocation11 + $0x10] sm:$0xff] %v397_v43 }
 0x145   :  { %402 = vst [vmem:[#allocation11 + $0x18] sm:$0xff] %v398_v46 }
 0x146   :  { %621 = shalt.err (!%p618_p8)
}
 0x147   :  { %s622_s15 = scalar_lea.hbm %s754_s4, 512 }
 0x148   :  { %p623_p9 = scmp.ne.s32.totalorder %s754_s4, %s622_s15  ;;  %p626_p10 = scmp.lt.u32.totalorder %s622_s15, %s754_s4 }
 0x14a   :  { %p628_p11 = pnand %p626_p10, %p623_p9 }
 0x14c   :  { %631 = shalt.err (!%p628_p11)
}
 0x14d   :  { %s650_s20 = smov 256   ;;  %s651_s21 = smov 16  }
 0x14e   :  { %414 = dma.vmem_to_hbm [thread:$0]  %s409_s25, 512, %s754_s4, [#allocation5], %s650_s20, %s650_s20, %s651_s21  }
 0x14f   :  { %638 = dma.done.wait [#allocation5], 512  }
 0x150   :  { %639 = vsyncadd [#allocation5], 4294966784 }
 0x151   :  { %418 = vsyncpa [#allocation4], 1 }
 0x152   :  { %419 = vsyncpa [#allocation7], 1 }
 0x153   :  { %420 = vsyncpa [#allocation10], 1 }
 0x154   :  { %421 = vsyncpa [#allocation5], 1 }

</bundles_post_ra>
